<compile_context>
chip_gen: v5e
topology: v5e:2x2
jax: 0.10.0
libtpu: 0.0.40
codegen_flags: <defaults>
</compile_context>

<pallas_src>
import functools

import jax
import jax.numpy as jnp
from jax.experimental import pallas as pl
from jax.experimental.pallas import tpu as pltpu


_TARGET_BLOCK_BYTES = 2 * 1024 * 1024   # ~2 MiB per buffer; 4 live buffers = 8 MiB VMEM
_MIN_GRID_STEPS = 4                     # keep >= 4 steps so both v7x TCs stream
_MIN_PALLAS_BYTES = 1 << 20             # below ~1 MiB plain XLA is already at roofline


def _posterize_kernel(img_ref, out_ref, *, mask, as_u32):
    """Elementwise posterize on one (block_rows, lane) uint8 tile."""
    if as_u32:
        # Reinterpret the packed uint8 vregs as uint32 (free, register-level) and
        # AND with the mask replicated into all four bytes.  The byte->word
        # grouping done by the bitcast is irrelevant because the mask is applied
        # identically to every byte, so the round trip is exact.
        mask32 = jnp.uint32((mask & 0xFF) * 0x01010101)
        x32 = pltpu.bitcast(img_ref[...], jnp.uint32)
        out_ref[...] = pltpu.bitcast(x32 & mask32, jnp.uint8)
    else:
        out_ref[...] = img_ref[...] & jnp.uint8(mask)


def _choose_lane(total):
    """Pick the widest lane-dense last dim that divides `total` exactly."""
    for lane in (2048, 1024, 512, 256, 128):
        if total % lane == 0:
            return lane
    # Callers guarantee total % 128 == 0 before reaching the Pallas path.
    raise ValueError("total element count must be a multiple of 128")


def _plan_block_rows(rows, lane):
    """Pick block_rows: ~2 MiB blocks, >= _MIN_GRID_STEPS steps, full last tile."""
    target_rows = max(32, _TARGET_BLOCK_BYTES // lane)
    # Cap so the grid keeps at least _MIN_GRID_STEPS iterations (megacore sharding).
    cap_rows = max(32, pl.cdiv(rows, _MIN_GRID_STEPS))
    block_rows = min(rows, target_rows, cap_rows)
    # Round down to a multiple of 32 (uint8 sublane packing), floor at 32.
    block_rows = max(32, (block_rows // 32) * 32)
    block_rows = min(block_rows, rows)
    # Prefer a block_rows that divides rows exactly so no step is a partial tile.
    if block_rows >= 32 and rows % block_rows:
        lower = max(32, (block_rows // 2 // 32) * 32)
        for cand in range(block_rows, lower - 1, -32):
            if rows % cand == 0:
                block_rows = cand
                break
    return block_rows


def _posterize_pallas(slab, mask):
    rows, lane = slab.shape
    block_rows = _plan_block_rows(rows, lane)
    grid = (pl.cdiv(rows, block_rows),)

    # uint32 reinterpretation needs sublane-aligned (multiple of 32) blocks.
    as_u32 = (block_rows % 32) == 0
    kernel = functools.partial(_posterize_kernel, mask=mask, as_u32=as_u32)

    return pl.pallas_call(
        kernel,
        out_shape=jax.ShapeDtypeStruct(slab.shape, slab.dtype),
        grid=grid,
        in_specs=[pl.BlockSpec((block_rows, lane), lambda i: (i, 0))],
        out_specs=pl.BlockSpec((block_rows, lane), lambda i: (i, 0)),
        input_output_aliases={0: 0},
        compiler_params=pltpu.CompilerParams(
            dimension_semantics=("parallel",),
        ),
    )(slab)


def posterize(image, bboxs, key, p, bits, *, min_pallas_bytes=_MIN_PALLAS_BYTES):
    """JAX/Pallas equivalent of Posterize(p, bits).forward(image, bboxs)."""
    bits = int(bits)
    assert 0 <= bits <= 8
    p = float(p)
    mask = (0xFF << (8 - bits)) & 0xFF if bits > 0 else 0

    # Trace-time identity short-circuits: never applied, or posterize is a no-op.
    if p <= 0.0 or mask == 0xFF:
        return image, bboxs

    orig_shape = image.shape
    total = int(image.size)

    # Pallas streaming path only pays off for lane-dense, >= ~1 MiB uint8 images;
    # everything else uses the fused XLA elementwise AND (already at roofline,
    # and avoids any pad/slice extra HBM traffic for ragged sizes).
    use_pallas = (
        image.dtype == jnp.uint8
        and total >= int(min_pallas_bytes)
        and total % 128 == 0
        and total > 0
    )

    def _apply(img):
        if not use_pallas:
            return img & jnp.asarray(mask, dtype=img.dtype)
        lane = _choose_lane(total)
        slab = img.reshape(-1, lane)
        return _posterize_pallas(slab, mask).reshape(orig_shape)

    if p >= 1.0:
        # Always applied (torch.rand(1) in [0,1) < 1.0 is always true).
        out = _apply(image)
    else:
        # Probability gate hoisted out of the kernel: the "skip" branch does
        # not stream the image through HBM at all.
        # TODO(synk): torch.rand(1) is host-side RNG; here it is an explicit jax.random key.
        u = jax.random.uniform(key, (), dtype=jnp.float32)
        out = jax.lax.cond(u < p, _apply, lambda x: x, image)

    return out, bboxs


if __name__ == "__main__":
    key = jax.random.PRNGKey(0)
    k_img, k_box, k_gate, k_big = jax.random.split(key, 4)

    # Small NCHW uint8 image, consistent with the module's forward.
    image = jax.random.randint(
        k_img, (2, 4, 16, 16), minval=0, maxval=256, dtype=jnp.int32
    ).astype(jnp.uint8)
    # Simple bboxes tensor (passed through unchanged).
    bboxs = jax.random.uniform(k_box, (2, 3, 4), dtype=jnp.float32)

    bits = 3  # keep top 3 bits of each channel value
    mask = jnp.uint8((0xFF << (8 - bits)) & 0xFF)
    ref = image & mask

    # p = 1.0, small image: default path (XLA fallback for sub-MiB inputs).
    out_img, out_boxes = posterize(image, bboxs, k_gate, 1.0, bits)
    jax.block_until_ready(out_img)
    jax.block_until_ready(out_boxes)
    assert jnp.array_equal(out_img, ref), "posterize mismatch (p=1.0, XLA path)"
    assert jnp.array_equal(out_boxes, bboxs), "bboxes must pass through"

    # Same small image forced through the Pallas kernel (uint8 branch).
    out_forced, _ = posterize(image, bboxs, k_gate, 1.0, bits, min_pallas_bytes=0)
    jax.block_until_ready(out_forced)
    assert jnp.array_equal(out_forced, ref), "posterize mismatch (forced Pallas path)"

    # p = 0.0: trace-time identity (no kernel launched).
    out_id, _ = posterize(image, bboxs, k_gate, 0.0, bits)
    assert jnp.array_equal(out_id, image), "p=0 must be identity"

    # 0 < p < 1: exercise the lax.cond gated path; result must be one of the two.
    out_mid, _ = posterize(image, bboxs, k_gate, 0.5, bits)
    jax.block_until_ready(out_mid)
    assert jnp.array_equal(out_mid, ref) or jnp.array_equal(out_mid, image), \
        "stochastic path must be identity or posterized"

    # Larger image (~1.5 MiB): default multi-step Pallas path (uint32 branch,
    # 4 grid steps, full tiles, both variants of the kernel now exercised).
    big = jax.random.randint(
        k_big, (2, 3, 512, 512), minval=0, maxval=256, dtype=jnp.int32
    ).astype(jnp.uint8)
    out_big, _ = posterize(big, bboxs, k_gate, 1.0, bits)
    jax.block_until_ready(out_big)
    assert jnp.array_equal(out_big, big & mask), "posterize mismatch (large image)"

    # Non-multiple-of-128 element count: ragged sizes use the XLA fallback.
    odd = jax.random.randint(
        jax.random.PRNGKey(1), (1, 3, 5, 7), minval=0, maxval=256, dtype=jnp.int32
    ).astype(jnp.uint8)
    out_odd, _ = posterize(odd, bboxs, k_gate, 1.0, bits)
    jax.block_until_ready(out_odd)
    assert jnp.array_equal(out_odd, odd & mask), "posterize mismatch (ragged size)"

    print("KERNEL_OK")
</pallas_src>

<mosaic_0001>
module attributes {stable_mosaic.version = 11 : i64} {
  func.func @_posterize_kernel(%arg0: i32, %arg1: memref<1x2048xi8, #tpu.memory_space<vmem>>, %arg2: memref<1x2048xi8, #tpu.memory_space<vmem>>) attributes {dimension_semantics = [#tpu.dimension_semantics<parallel>], iteration_bounds = array<i64: 1>, scalar_prefetch = 0 : i64, scratch_operands = 0 : i64, tpu.core_type = #tpu.core_type<tc>, window_params = [{transform_indices = @transform_0, window_bounds = array<i64: 1, 2048>}, {transform_indices = @transform_1, window_bounds = array<i64: 1, 2048>}]} {
    %c0 = arith.constant 0 : index
    %c0_0 = arith.constant 0 : index
    %0 = vector.load %arg1[%c0, %c0_0] : memref<1x2048xi8, #tpu.memory_space<vmem>>, vector<1x2048xi8>
    %c-32_i8 = arith.constant -32 : i8
    %1 = vector.broadcast %c-32_i8 : i8 to vector<1x2048xi8>
    %2 = arith.andi %0, %1 : vector<1x2048xi8>
    %c0_1 = arith.constant 0 : index
    %c0_2 = arith.constant 0 : index
    %3 = vector.load %arg2[%c0_1, %c0_2] : memref<1x2048xi8, #tpu.memory_space<vmem>>, vector<1x2048xi8>
    tpu.vector_store %arg2[%c0_1, %c0_2], %2 {strides = array<i32>} : memref<1x2048xi8, #tpu.memory_space<vmem>>, vector<1x2048xi8>,
    return
  }
  func.func @transform_0(%arg0: i32) -> (i32, i32) {
    %c0_i32 = arith.constant 0 : i32
    %c0_i32_0 = arith.constant 0 : i32
    return %arg0, %c0_i32 : i32, i32
  }
  func.func @transform_1(%arg0: i32) -> (i32, i32) {
    %c0_i32 = arith.constant 0 : i32
    %c0_i32_0 = arith.constant 0 : i32
    return %arg0, %c0_i32 : i32, i32
  }
}

</mosaic_0001>

<bundles_post_ra>
// kernel: tpu_custom_call.1
= control target key start
LH: loop header
LB: loop body
LE: loop exit
PB: predicated region body
PF: predicated region fallthrough
CT: control target
= control target key end

     0   :  { %6 = vsyncpa [#allocation3], 0  ;;  %s154_s0 = inlined_call_operand.hbm [shape: u8[1,2048], index: 0, kind: input, shape index: {}, may-alias: {0,1}]   ;;  %s155_s1 = inlined_call_operand.hbm [shape: u8[1,2048], index: 1, kind: output, shape index: {}, may-alias: {0,1}]  }
   0x1   :  { %7 = vsyncpa [#allocation4], 0  ;;  %s13_s8 = sshll.u32 %s154_s0, 4  ;;  %s136_s9 = smov [#allocation2]   ;;  %s14_s8 = int_to_ptr.hbm [resolvable:$true] %s13_s8 }
   0x2   :  { %s15_s10 = sshll.u32 %s136_s9, 4  ;;  %s16_s10 = int_to_ptr.vmem [resolvable:$true] %s15_s10 }
   0x3   :  { %18 = dma.hbm_to_vmem [thread:$0]  %s14_s8, 256, %s16_s10, [#allocation3]  }
   0x4   :  { %132 = dma.done.wait [#allocation3], 256  }
   0x5   :  { %133 = vsyncadd [#allocation3], 4294967040  ;;  %vm28_vm0 = vcmask 1040384   ;;  %vm29_vm1 = vsmask.f32 0  ;;  %vm31_vm2 = vcmask 1041409  }
   0x6   :  { %vm30_vm3 = vmand %vm28_vm0, %vm29_vm1  ;;  %vm32_vm4 = vsmask.f32 1024  ;;  %vm35_vm5 = vcmask 1042434   ;;  %vm36_vm6 = vsmask.f32 2048  ;;  %vm39_vm9 = vcmask 1043459  }
   0x7   :  { %vm33_vm7 = vmand %vm31_vm2, %vm32_vm4  ;;  %vm40_vm10 = vsmask.f32 3072  ;;  %vm43_vm13 = vcmask 1044484   ;;  %vm44_vm14 = vsmask.f32 4096  ;;  %vm47_vm1 = vcmask 1045509  }
   0x8   :  { %vm34_vm8 = vmor %vm33_vm7, %vm30_vm3  ;;  %vm48_vm2 = vsmask.f32 5120  ;;  %v24_v0 = vld [vmem:[#allocation2] sm:$0xff]  ;;  %vm51_vm7 = vcmask 1046534   ;;  %v25_v1 = vld [vmem:[#allocation2 + $0x8] sm:$0xff]  ;;  %s137_s0 = smov [#allocation5]  }
   0x9   :  { %vm37_vm11 = vmand %vm35_vm5, %vm36_vm6  ;;  %vm52_vm5 = vsmask.f32 6144  ;;  %v26_v2 = vand.u32 3772834016, %v24_v0  ;;  %v27_v3 = vand.u32 3772834016, %v25_v1 }
   0xa   :  { %vm38_vm12 = vmor %vm37_vm11, %vm34_vm8  ;;  %vm55_vm11 = vcmask 1047559   ;;  %v59_v4 = vld [vmem:[#allocation5] sm:$0xff]  ;;  %v62_v5 = vld [vmem:[#allocation5 + $0x8] sm:$0xff]  ;;  %s70_s11 = sshll.u32 %s137_s0, 4  ;;  %s72_s14 = sshll.u32 %s155_s1, 4  ;;  %s71_s11 = int_to_ptr.vmem [resolvable:$true] %s70_s11  ;;  %s73_s14 = int_to_ptr.hbm [resolvable:$true] %s72_s14 }
   0xb   :  { %vm41_vm15 = vmand %vm39_vm9, %vm40_vm10  ;;  %vm56_vm9 = vsmask.f32 7168 }
   0xc   :  { %vm42_vm0 = vmor %vm41_vm15, %vm38_vm12 }
   0xd   :  { %vm45_vm4 = vmand %vm43_vm13, %vm44_vm14 }
   0xe   :  { %vm46_vm3 = vmor %vm45_vm4, %vm42_vm0 }
   0xf   :  { %vm49_vm6 = vmand %vm47_vm1, %vm48_vm2 }
  0x10   :  { %vm50_vm8 = vmor %vm49_vm6, %vm46_vm3 }
  0x11   :  { %vm53_vm10 = vmand %vm51_vm7, %vm52_vm5 }
  0x12   :  { %vm54_vm12 = vmor %vm53_vm10, %vm50_vm8 }
  0x13   :  { %vm57_vm13 = vmand %vm55_vm11, %vm56_vm9 }
  0x14   :  { %vm58_vm14 = vmor %vm57_vm13, %vm54_vm12 }
  0x15   :  { %v60_v6 = vsel %vm58_vm14, %v26_v2, %v59_v4  ;;  %v63_v7 = vsel %vm58_vm14, %v27_v3, %v62_v5 }
  0x16   :  { %61 = vst [vmem:[#allocation5] sm:$0xff] %v60_v6 }
  0x17   :  { %64 = vst [vmem:[#allocation5 + $0x8] sm:$0xff] %v63_v7 }
  0x18   :  { %75 = dma.vmem_to_hbm [thread:$0]  %s71_s11, 256, %s73_s14, [#allocation4]  }
  0x19   :  { %134 = dma.done.wait [#allocation4], 256  }
  0x1a   :  { %135 = vsyncadd [#allocation4], 4294967040 }
  0x1b   :  { %80 = vsyncpa [#allocation3], 1 }
  0x1c   :  { %81 = vsyncpa [#allocation4], 1 }

</bundles_post_ra>
